<compile_context>
chip_gen: v7x
topology: tpu7x:2x2x1
jax: 0.10.0
libtpu: 0.0.40
codegen_flags: <defaults>
</compile_context>

<pallas_src>
import jax
import jax.numpy as jnp
from jax.experimental import pallas as pl
from jax.experimental.pallas import tpu as pltpu

INPUT_SIZE = 16
FC1_UNITS = 36
FC2_UNITS = 36
EMBEDDING_SIZE = 8
LN_EPS = 1e-5

_LANE = 128                      # TPU lane width
_MAX_TILE = 8192                 # max batch columns per grid step
_VMEM_LIMIT = 40 * 1024 * 1024   # explicit: v5e default (16 MiB) is too small


def _round_up(a, b):
    return (a + b - 1) // b * b


def _cdiv(a, b):
    return -(-a // b)


def _pick_grid(batch, max_tile):
    """Choose (tile, steps): as few, balanced, 128-aligned steps as possible.

    Keeps the grid even when >1 step (v7x: 2 TensorCores share the 'parallel'
    axis) and guarantees every input block is at least partially in-bounds so
    padding waste stays below one lane-tile per step."""
    b128 = _round_up(max(batch, 1), _LANE)
    steps = _cdiv(b128, max_tile)
    if steps > 1 and steps % 2:
        steps += 1
    tile = _round_up(_cdiv(b128, steps), _LANE)
    while steps > 1 and tile * (steps - 1) >= batch:
        steps -= 1                    # drop fully out-of-range trailing blocks
    return tile, steps


def _ln_relu(h, p):
    """LayerNorm + ReLU over the feature (sublane) axis of h = [F+1, T].

    Row F of h is the per-column feature mean, produced for free by the MXU via
    an augmented weight row (see _augment).  Variance is single-pass
    (E[x^2]-mu^2), computed from a sum over all F+1 rows and corrected for the
    extra mean row, clamped at 0 before rsqrt to guard against cancellation.
    Row F of the result is exactly 0 (its gamma/beta are 0), so the zero column
    appended to the next layer's weights is never polluted."""
    f = h.shape[0] - 1
    mu = h[f:f + 1, :]                                    # [1, T] from the MXU
    s2 = jnp.sum(h * h, axis=0, keepdims=True)            # includes the mu^2 row
    var = s2 * (1.0 / f) - mu * mu * ((f + 1.0) / f)
    inv = jax.lax.rsqrt(jnp.maximum(var, 0.0) + LN_EPS)   # EUP
    return jnp.maximum((h - mu) * (inv * p[:, 1:2]) + p[:, 2:3], 0.0)


def policy_repr_kernel(x_ref, w1_ref, p1_ref, w2_ref, p2_ref, w3_ref, b3_ref,
                       oT_ref):
    x = x_ref[...]                        # [T, IN]  natural-layout batch rows
    p1 = p1_ref[...]                      # [FC1+1, 3] = (bias, gamma, beta)
    p2 = p2_ref[...]                      # [FC2+1, 3]

    # fc1 (+ fused mean row): contract the two feature axes directly (w1a @ x^T);
    # the RHS transpose is done inside the kernel, never in HBM.
    h = jax.lax.dot_general(w1_ref[...], x, (((1,), (1,)), ((), ())),
                            preferred_element_type=jnp.float32)   # [FC1+1, T]
    h = _ln_relu(h + p1[:, 0:1], p1)

    # fc2 (+ fused mean row)
    h = jnp.dot(w2_ref[...], h, preferred_element_type=jnp.float32)
    h = _ln_relu(h + p2[:, 0:1], p2)

    # fc3 -> transposed, lane-dense output tile
    out = jnp.dot(w3_ref[...], h, preferred_element_type=jnp.float32) + b3_ref[...]
    oT_ref[...] = out.astype(oT_ref.dtype)


def _augment(w, b, g, be, extra_in_col):
    """PyTorch-layout layer params -> MXU-mean-augmented operands.

    Returns wa [out+1, in(+1)] whose last row computes the feature mean of
    (w @ x + b), and p [out+1, 3] = (bias, gamma, beta) with the padded row's
    gamma/beta set to 0."""
    w = w.astype(jnp.float32)
    if extra_in_col:
        w = jnp.pad(w, ((0, 0), (0, 1)))      # consume the 0-row of the input
    wa = jnp.concatenate([w, jnp.mean(w, axis=0, keepdims=True)], axis=0)
    bf = b.astype(jnp.float32)
    z = jnp.zeros((1,), jnp.float32)
    ba = jnp.concatenate([bf, jnp.mean(bf, keepdims=True)])
    ga = jnp.concatenate([g.astype(jnp.float32), z])
    bea = jnp.concatenate([be.astype(jnp.float32), z])
    return wa, jnp.stack([ba, ga, bea], axis=1)


def policy_representation(x, params, *, max_tile=_MAX_TILE, use_bf16=False):
    """x: any shape reshapable to (-1, INPUT_SIZE).
    params: PyTorch-layout tensors (w_i: [out, in], vectors: [features])."""
    (w1, b1, g1, be1, w2, b2, g2, be2, w3, b3) = params

    x2d = x.reshape(-1, INPUT_SIZE)
    batch = x2d.shape[0]
    tile, steps = _pick_grid(batch, max_tile)
    b_pad = tile * steps

    # One-off parameter prep (tiny): fold the LN mean into an extra weight row,
    # fuse (bias, gamma, beta) per layer, keep PyTorch [out, in] layout.
    w1a, p1 = _augment(w1, b1, g1, be1, extra_in_col=False)     # [37,16],[37,3]
    w2a, p2 = _augment(w2, b2, g2, be2, extra_in_col=True)      # [37,37],[37,3]
    w3a = jnp.pad(w3.astype(jnp.float32), ((0, 0), (0, 1)))     # [8,37]
    b3c = b3.reshape(EMBEDDING_SIZE, 1).astype(jnp.float32)     # [8,1]

    # Pre-cast OUTSIDE the kernel (no per-step casts; bf16 halves the x DMA).
    in_dt = jnp.bfloat16 if use_bf16 else jnp.float32
    x2d = x2d.astype(in_dt)
    w1a = w1a.astype(in_dt)

    full = lambda a: pl.BlockSpec(a.shape, lambda i: (0, 0))

    flops = 2 * b_pad * (INPUT_SIZE * (FC1_UNITS + 1)
                         + (FC1_UNITS + 1) * (FC2_UNITS + 1)
                         + (FC2_UNITS + 1) * EMBEDDING_SIZE)
    bytes_accessed = (x2d.dtype.itemsize * batch * INPUT_SIZE
                      + 4 * b_pad * EMBEDDING_SIZE
                      + 4 * (w1a.size + p1.size + w2a.size + p2.size
                             + w3a.size + b3c.size))

    outT = pl.pallas_call(
        policy_repr_kernel,
        out_shape=jax.ShapeDtypeStruct((EMBEDDING_SIZE, b_pad), jnp.float32),
        grid_spec=pltpu.PrefetchScalarGridSpec(
            num_scalar_prefetch=0,
            grid=(steps,),
            in_specs=[
                pl.BlockSpec((tile, INPUT_SIZE), lambda i: (i, 0)),  # x rows
                full(w1a), full(p1), full(w2a), full(p2), full(w3a), full(b3c),
            ],
            out_specs=pl.BlockSpec((EMBEDDING_SIZE, tile), lambda i: (0, i)),
        ),
        compiler_params=pltpu.CompilerParams(
            dimension_semantics=("parallel",),
            vmem_limit_bytes=_VMEM_LIMIT),
        cost_estimate=pl.CostEstimate(
            flops=flops,
            transcendentals=2 * b_pad,        # two rsqrt per batch column
            bytes_accessed=bytes_accessed),
    )(x2d, w1a, p1, w2a, p2, w3a, b3c)

    # Only the (tiny) output needs re-orienting; the input-side pad+transpose,
    # which dominated HBM traffic, is gone.
    return outT[:, :batch].T


def init_params(key):
    """Deterministic synthetic parameters in PyTorch layout."""
    k = jax.random.split(key, 6)
    w1 = jax.random.normal(k[0], (FC1_UNITS, INPUT_SIZE), jnp.float32) * 0.1
    b1 = jax.random.normal(k[1], (FC1_UNITS,), jnp.float32) * 0.1
    g1 = jnp.ones((FC1_UNITS,), jnp.float32)
    be1 = jnp.zeros((FC1_UNITS,), jnp.float32)
    w2 = jax.random.normal(k[2], (FC2_UNITS, FC1_UNITS), jnp.float32) * 0.1
    b2 = jax.random.normal(k[3], (FC2_UNITS,), jnp.float32) * 0.1
    g2 = jnp.ones((FC2_UNITS,), jnp.float32)
    be2 = jnp.zeros((FC2_UNITS,), jnp.float32)
    w3 = jax.random.normal(k[4], (EMBEDDING_SIZE, FC2_UNITS), jnp.float32) * 0.1
    b3 = jax.random.normal(k[5], (EMBEDDING_SIZE,), jnp.float32) * 0.1
    return (w1, b1, g1, be1, w2, b2, g2, be2, w3, b3)


def reference(x, params):
    """Pure-JAX reference matching the PyTorch module (row-major, two-pass LN)."""
    (w1, b1, g1, be1, w2, b2, g2, be2, w3, b3) = params
    hp = jax.lax.Precision.HIGHEST

    def ln(h, g, b):
        mu = jnp.mean(h, axis=-1, keepdims=True)
        var = jnp.mean((h - mu) ** 2, axis=-1, keepdims=True)
        return (h - mu) / jnp.sqrt(var + LN_EPS) * g + b

    h = x.reshape(-1, INPUT_SIZE)
    h = jnp.maximum(ln(jnp.dot(h, w1.T, precision=hp) + b1, g1, be1), 0.0)
    h = jnp.maximum(ln(jnp.dot(h, w2.T, precision=hp) + b2, g2, be2), 0.0)
    return jnp.dot(h, w3.T, precision=hp) + b3


if __name__ == "__main__":
    key = jax.random.PRNGKey(0)
    kx, kp = jax.random.split(key)
    params = init_params(kp)

    # 10 samples x 30 agents x 16 policy features -> view(-1, 16) = 300 rows
    # (exercises the partial-boundary batch block).
    x = jax.random.normal(kx, (10, 30, INPUT_SIZE), jnp.float32)
    out = jax.block_until_ready(policy_representation(x, params))
    ref = reference(x, params)
    assert out.shape == (300, EMBEDDING_SIZE)
    assert jnp.allclose(out, ref, atol=2e-4, rtol=2e-4), \
        float(jnp.max(jnp.abs(out - ref)))

    # Tiny batch (single partial block).
    x2 = jax.random.normal(kx, (2, 4, INPUT_SIZE), jnp.float32)
    out2 = jax.block_until_ready(policy_representation(x2, params))
    ref2 = reference(x2, params)
    assert out2.shape == (8, EMBEDDING_SIZE)
    assert jnp.allclose(out2, ref2, atol=2e-4, rtol=2e-4), \
        float(jnp.max(jnp.abs(out2 - ref2)))

    # Force a multi-step grid (exercises pipelining + partial last block).
    out3 = jax.block_until_ready(policy_representation(x, params, max_tile=128))
    assert out3.shape == (300, EMBEDDING_SIZE)
    assert jnp.allclose(out3, ref, atol=2e-4, rtol=2e-4), \
        float(jnp.max(jnp.abs(out3 - ref)))

    print("KERNEL_OK")
</pallas_src>

<mosaic_0001>
module attributes {stable_mosaic.version = 11 : i64} {
  func.func @policy_repr_kernel(%arg0: i32, %arg1: memref<384x16xf32, #tpu.memory_space<vmem>>, %arg2: memref<37x16xf32, #tpu.memory_space<vmem>>, %arg3: memref<37x3xf32, #tpu.memory_space<vmem>>, %arg4: memref<37x37xf32, #tpu.memory_space<vmem>>, %arg5: memref<37x3xf32, #tpu.memory_space<vmem>>, %arg6: memref<8x37xf32, #tpu.memory_space<vmem>>, %arg7: memref<8x1xf32, #tpu.memory_space<vmem>>, %arg8: memref<8x384xf32, #tpu.memory_space<vmem>>) attributes {dimension_semantics = [#tpu.dimension_semantics<parallel>], iteration_bounds = array<i64: 1>, scalar_prefetch = 0 : i64, scratch_operands = 0 : i64, tpu.core_type = #tpu.core_type<tc>, window_params = [{transform_indices = @transform_0, window_bounds = array<i64: 384, 16>}, {pipeline_mode = #tpu.pipeline_mode<synchronous>, transform_indices = @transform_1, window_bounds = array<i64: 37, 16>}, {pipeline_mode = #tpu.pipeline_mode<synchronous>, transform_indices = @transform_2, window_bounds = array<i64: 37, 3>}, {pipeline_mode = #tpu.pipeline_mode<synchronous>, transform_indices = @transform_3, window_bounds = array<i64: 37, 37>}, {pipeline_mode = #tpu.pipeline_mode<synchronous>, transform_indices = @transform_4, window_bounds = array<i64: 37, 3>}, {pipeline_mode = #tpu.pipeline_mode<synchronous>, transform_indices = @transform_5, window_bounds = array<i64: 8, 37>}, {pipeline_mode = #tpu.pipeline_mode<synchronous>, transform_indices = @transform_6, window_bounds = array<i64: 8, 1>}, {transform_indices = @transform_7, window_bounds = array<i64: 8, 384>}]} {
    %c0 = arith.constant 0 : index
    %c0_0 = arith.constant 0 : index
    %0 = vector.load %arg1[%c0, %c0_0] : memref<384x16xf32, #tpu.memory_space<vmem>>, vector<384x16xf32>
    %c0_1 = arith.constant 0 : index
    %c0_2 = arith.constant 0 : index
    %1 = vector.load %arg3[%c0_1, %c0_2] : memref<37x3xf32, #tpu.memory_space<vmem>>, vector<37x3xf32>
    %c0_3 = arith.constant 0 : index
    %c0_4 = arith.constant 0 : index
    %2 = vector.load %arg5[%c0_3, %c0_4] : memref<37x3xf32, #tpu.memory_space<vmem>>, vector<37x3xf32>
    %c0_5 = arith.constant 0 : index
    %c0_6 = arith.constant 0 : index
    %3 = vector.load %arg2[%c0_5, %c0_6] : memref<37x16xf32, #tpu.memory_space<vmem>>, vector<37x16xf32>
    %cst = arith.constant dense<0.000000e+00> : vector<37x384xf32>
    %4 = tpu.matmul %3, %0, %cst {dimension_numbers = #tpu.dot_dimension_numbers<[1], [1], [0], [0], [0, 0, 1, 0], [], []>} : vector<37x16xf32>, vector<384x16xf32>, vector<37x384xf32> -> vector<37x384xf32>
    %5 = vector.extract_strided_slice %1 {offsets = [0, 0], sizes = [37, 1], strides = [1, 1]} : vector<37x3xf32> to vector<37x1xf32>
    %6 = vector.broadcast %5 : vector<37x1xf32> to vector<37x384xf32>
    %7 = arith.addf %4, %6 : vector<37x384xf32>
    %8 = vector.extract_strided_slice %7 {offsets = [36, 0], sizes = [1, 384], strides = [1, 1]} : vector<37x384xf32> to vector<1x384xf32>
    %9 = arith.mulf %7, %7 : vector<37x384xf32>
    %cst_7 = arith.constant dense<0.000000e+00> : vector<384xf32>
    %10 = vector.multi_reduction <add>, %9, %cst_7 [0] : vector<37x384xf32> to vector<384xf32>
    %11 = vector.shape_cast %10 : vector<384xf32> to vector<1x384xf32>
    %cst_8 = arith.constant 0.027777778 : f32
    %12 = vector.broadcast %cst_8 : f32 to vector<1x384xf32>
    %13 = arith.mulf %11, %12 : vector<1x384xf32>
    %14 = arith.mulf %8, %8 : vector<1x384xf32>
    %cst_9 = arith.constant 1.02777779 : f32
    %15 = vector.broadcast %cst_9 : f32 to vector<1x384xf32>
    %16 = arith.mulf %14, %15 : vector<1x384xf32>
    %17 = arith.subf %13, %16 : vector<1x384xf32>
    %cst_10 = arith.constant 0.000000e+00 : f32
    %18 = vector.broadcast %cst_10 : f32 to vector<1x384xf32>
    %19 = arith.maximumf %17, %18 : vector<1x384xf32>
    %cst_11 = arith.constant 9.99999974E-6 : f32
    %20 = vector.broadcast %cst_11 : f32 to vector<1x384xf32>
    %21 = arith.addf %19, %20 : vector<1x384xf32>
    %22 = math.rsqrt %21 : vector<1x384xf32>
    %23 = vector.broadcast %8 : vector<1x384xf32> to vector<37x384xf32>
    %24 = arith.subf %7, %23 : vector<37x384xf32>
    %25 = vector.extract_strided_slice %1 {offsets = [0, 1], sizes = [37, 1], strides = [1, 1]} : vector<37x3xf32> to vector<37x1xf32>
    %26 = vector.broadcast %22 : vector<1x384xf32> to vector<37x384xf32>
    %27 = vector.broadcast %25 : vector<37x1xf32> to vector<37x384xf32>
    %28 = arith.mulf %26, %27 : vector<37x384xf32>
    %29 = arith.mulf %24, %28 : vector<37x384xf32>
    %30 = vector.extract_strided_slice %1 {offsets = [0, 2], sizes = [37, 1], strides = [1, 1]} : vector<37x3xf32> to vector<37x1xf32>
    %31 = vector.broadcast %30 : vector<37x1xf32> to vector<37x384xf32>
    %32 = arith.addf %29, %31 : vector<37x384xf32>
    %cst_12 = arith.constant 0.000000e+00 : f32
    %33 = vector.broadcast %cst_12 : f32 to vector<37x384xf32>
    %34 = arith.maximumf %32, %33 : vector<37x384xf32>
    %c0_13 = arith.constant 0 : index
    %c0_14 = arith.constant 0 : index
    %35 = vector.load %arg4[%c0_13, %c0_14] : memref<37x37xf32, #tpu.memory_space<vmem>>, vector<37x37xf32>
    %cst_15 = arith.constant dense<0.000000e+00> : vector<37x384xf32>
    %36 = tpu.matmul %35, %34, %cst_15 {dimension_numbers = #tpu.dot_dimension_numbers<[1], [0], [0], [1], [0, 0, 1, 1], [], []>} : vector<37x37xf32>, vector<37x384xf32>, vector<37x384xf32> -> vector<37x384xf32>
    %37 = vector.extract_strided_slice %2 {offsets = [0, 0], sizes = [37, 1], strides = [1, 1]} : vector<37x3xf32> to vector<37x1xf32>
    %38 = vector.broadcast %37 : vector<37x1xf32> to vector<37x384xf32>
    %39 = arith.addf %36, %38 : vector<37x384xf32>
    %40 = vector.extract_strided_slice %39 {offsets = [36, 0], sizes = [1, 384], strides = [1, 1]} : vector<37x384xf32> to vector<1x384xf32>
    %41 = arith.mulf %39, %39 : vector<37x384xf32>
    %cst_16 = arith.constant dense<0.000000e+00> : vector<384xf32>
    %42 = vector.multi_reduction <add>, %41, %cst_16 [0] : vector<37x384xf32> to vector<384xf32>
    %43 = vector.shape_cast %42 : vector<384xf32> to vector<1x384xf32>
    %cst_17 = arith.constant 0.027777778 : f32
    %44 = vector.broadcast %cst_17 : f32 to vector<1x384xf32>
    %45 = arith.mulf %43, %44 : vector<1x384xf32>
    %46 = arith.mulf %40, %40 : vector<1x384xf32>
    %cst_18 = arith.constant 1.02777779 : f32
    %47 = vector.broadcast %cst_18 : f32 to vector<1x384xf32>
    %48 = arith.mulf %46, %47 : vector<1x384xf32>
    %49 = arith.subf %45, %48 : vector<1x384xf32>
    %cst_19 = arith.constant 0.000000e+00 : f32
    %50 = vector.broadcast %cst_19 : f32 to vector<1x384xf32>
    %51 = arith.maximumf %49, %50 : vector<1x384xf32>
    %cst_20 = arith.constant 9.99999974E-6 : f32
    %52 = vector.broadcast %cst_20 : f32 to vector<1x384xf32>
    %53 = arith.addf %51, %52 : vector<1x384xf32>
    %54 = math.rsqrt %53 : vector<1x384xf32>
    %55 = vector.broadcast %40 : vector<1x384xf32> to vector<37x384xf32>
    %56 = arith.subf %39, %55 : vector<37x384xf32>
    %57 = vector.extract_strided_slice %2 {offsets = [0, 1], sizes = [37, 1], strides = [1, 1]} : vector<37x3xf32> to vector<37x1xf32>
    %58 = vector.broadcast %54 : vector<1x384xf32> to vector<37x384xf32>
    %59 = vector.broadcast %57 : vector<37x1xf32> to vector<37x384xf32>
    %60 = arith.mulf %58, %59 : vector<37x384xf32>
    %61 = arith.mulf %56, %60 : vector<37x384xf32>
    %62 = vector.extract_strided_slice %2 {offsets = [0, 2], sizes = [37, 1], strides = [1, 1]} : vector<37x3xf32> to vector<37x1xf32>
    %63 = vector.broadcast %62 : vector<37x1xf32> to vector<37x384xf32>
    %64 = arith.addf %61, %63 : vector<37x384xf32>
    %cst_21 = arith.constant 0.000000e+00 : f32
    %65 = vector.broadcast %cst_21 : f32 to vector<37x384xf32>
    %66 = arith.maximumf %64, %65 : vector<37x384xf32>
    %c0_22 = arith.constant 0 : index
    %c0_23 = arith.constant 0 : index
    %67 = vector.load %arg6[%c0_22, %c0_23] : memref<8x37xf32, #tpu.memory_space<vmem>>, vector<8x37xf32>
    %cst_24 = arith.constant dense<0.000000e+00> : vector<8x384xf32>
    %68 = tpu.matmul %67, %66, %cst_24 {dimension_numbers = #tpu.dot_dimension_numbers<[1], [0], [0], [1], [0, 0, 1, 1], [], []>} : vector<8x37xf32>, vector<37x384xf32>, vector<8x384xf32> -> vector<8x384xf32>
    %c0_25 = arith.constant 0 : index
    %c0_26 = arith.constant 0 : index
    %69 = vector.load %arg7[%c0_25, %c0_26] : memref<8x1xf32, #tpu.memory_space<vmem>>, vector<8x1xf32>
    %70 = vector.broadcast %69 : vector<8x1xf32> to vector<8x384xf32>
    %71 = arith.addf %68, %70 : vector<8x384xf32>
    %c0_27 = arith.constant 0 : index
    %c0_28 = arith.constant 0 : index
    %72 = vector.load %arg8[%c0_27, %c0_28] : memref<8x384xf32, #tpu.memory_space<vmem>>, vector<8x384xf32>
    tpu.vector_store %arg8[%c0_27, %c0_28], %71 {strides = array<i32>} : memref<8x384xf32, #tpu.memory_space<vmem>>, vector<8x384xf32>,
    return
  }
  func.func @transform_0(%arg0: i32) -> (i32, i32) {
    %c0_i32 = arith.constant 0 : i32
    %c0_i32_0 = arith.constant 0 : i32
    return %arg0, %c0_i32 : i32, i32
  }
  func.func @transform_1(%arg0: i32) -> (i32, i32) {
    %c0_i32 = arith.constant 0 : i32
    %c0_i32_0 = arith.constant 0 : i32
    %c0_i32_1 = arith.constant 0 : i32
    return %c0_i32, %c0_i32_0 : i32, i32
  }
  func.func @transform_2(%arg0: i32) -> (i32, i32) {
    %c0_i32 = arith.constant 0 : i32
    %c0_i32_0 = arith.constant 0 : i32
    %c0_i32_1 = arith.constant 0 : i32
    return %c0_i32, %c0_i32_0 : i32, i32
  }
  func.func @transform_3(%arg0: i32) -> (i32, i32) {
    %c0_i32 = arith.constant 0 : i32
    %c0_i32_0 = arith.constant 0 : i32
    %c0_i32_1 = arith.constant 0 : i32
    return %c0_i32, %c0_i32_0 : i32, i32
  }
  func.func @transform_4(%arg0: i32) -> (i32, i32) {
    %c0_i32 = arith.constant 0 : i32
    %c0_i32_0 = arith.constant 0 : i32
    %c0_i32_1 = arith.constant 0 : i32
    return %c0_i32, %c0_i32_0 : i32, i32
  }
  func.func @transform_5(%arg0: i32) -> (i32, i32) {
    %c0_i32 = arith.constant 0 : i32
    %c0_i32_0 = arith.constant 0 : i32
    %c0_i32_1 = arith.constant 0 : i32
    return %c0_i32, %c0_i32_0 : i32, i32
  }
  func.func @transform_6(%arg0: i32) -> (i32, i32) {
    %c0_i32 = arith.constant 0 : i32
    %c0_i32_0 = arith.constant 0 : i32
    %c0_i32_1 = arith.constant 0 : i32
    return %c0_i32, %c0_i32_0 : i32, i32
  }
  func.func @transform_7(%arg0: i32) -> (i32, i32) {
    %c0_i32 = arith.constant 0 : i32
    %c0_i32_0 = arith.constant 0 : i32
    return %c0_i32, %arg0 : i32, i32
  }
}

</mosaic_0001>

<bundles_post_ra>
// kernel: tpu_custom_call.1
= control target key start
LH: loop header
LB: loop body
LE: loop exit
PB: predicated region body
PF: predicated region fallthrough
CT: control target
= control target key end

     0   :  { %vm115_vm0 = vcmask 130048   ;;  %v1695_v3 = vmov 0.0|0.0   ;;  %vm1696_vm2 = vmmov 0   ;;  %v1697_v12 = vmov 0.0   ;;  %s2429_s0 = inlined_call_operand.vmem [shape: f32[300,16], index: 0, kind: input, shape index: {}]   ;;  %s2430_s1 = inlined_call_operand.vmem [shape: f32[37,16], index: 1, kind: input, shape index: {}]   ;;  %s2431_s2 = inlined_call_operand.vmem [shape: f32[37,3], index: 2, kind: input, shape index: {}]   ;;  %s2432_s3 = inlined_call_operand.vmem [shape: f32[37,37], index: 3, kind: input, shape index: {}]   ;;  %s2433_s4 = inlined_call_operand.vmem [shape: f32[37,3], index: 4, kind: input, shape index: {}]   ;;  %s2434_s5 = inlined_call_operand.vmem [shape: f32[8,37], index: 5, kind: input, shape index: {}]   ;;  %s2435_s6 = inlined_call_operand.vmem [shape: f32[8,1], index: 6, kind: input, shape index: {}]   ;;  %s2436_s7 = inlined_call_operand.hbm [shape: f32[8,384], index: 7, kind: output, shape index: {}]  }
   0x1   :  { %v43_v0 = vld [vmem:[%s2429_s0 + $0x80] sm:$0xff]  ;;  %v44_v1 = vld [vmem:[%s2429_s0 + $0x88] sm:$0xff]  ;;  %1576 = vmatprep.subr.bf16.mxu1 %v1695_v3  ;;  %vm1754_vm1 = vmpackc.low %vm115_vm0, %vm115_vm0  ;;  %1475 = vmatprep.mubr.msk.f32.mxu1 %vm1696_vm2, %v1697_v12  ;;  %v1698_v13 = vmov 0  }
   0x2   :  { %v59_v2 = vld [vmem:[%s2429_s0 + $0x100] sm:$0xff]  ;;  %v1528_v4 = vpack.c.bf16 %v44_v1, %v43_v0  ;;  %v60_v6 = vld [vmem:[%s2429_s0 + $0x108] sm:$0xff]  ;;  %v45_v10 = vld [vmem:[%s2429_s0 + $0x90] sm:$0xff]  ;;  %1643 = vset.pattern.permute.xlu0 %v1698_v13  ;;  %1644 = vset.pattern.permute.xlu1 %v1698_v13 }
   0x3   :  { %v27_v7 = vld [vmem:[%s2429_s0] sm:$0xff]  ;;  %v1577_v8 = vpack.c.bf16 %v60_v6, %v59_v2  ;;  %v28_v9 = vld [vmem:[%s2429_s0 + $0x8] sm:$0xff]  ;;  %v46_v11 = vld [vmem:[%s2429_s0 + $0x98] sm:$0xff] }
   0x4   :  { %1530 = vmatprep.subr.msk.bf16.mxu0 %vm1754_vm1, %v1528_v4  ;;  %v1531_v14 = vpack.c.bf16 %v28_v9, %v27_v7  ;;  %v1534_v15 = vpack.c.bf16 %v46_v11, %v45_v10  ;;  %v61_v16 = vld [vmem:[%s2429_s0 + $0x110] sm:$0xff]  ;;  %v62_v17 = vld [vmem:[%s2429_s0 + $0x118] sm:$0xff]  ;;  %v47_v20 = vld [vmem:[%s2429_s0 + $0xa0] sm:$0xff] }
   0x5   :  { %1579 = vmatpush3.bf16.xpose.msk.msra.mxu1 %vm1754_vm1, %v1577_v8  ;;  %v29_v18 = vld [vmem:[%s2429_s0 + $0x10] sm:$0xff]  ;;  %v30_v19 = vld [vmem:[%s2429_s0 + $0x18] sm:$0xff]  ;;  %v48_v21 = vld [vmem:[%s2429_s0 + $0xa8] sm:$0xff]  ;;  %v1581_v22 = vpack.c.bf16 %v62_v17, %v61_v16 }
   0x6   :  { %1533 = vmatpush3.bf16.xpose.msk.msra.mxu0 %vm1754_vm1, %v1531_v14  ;;  %1580 = vmatprep.subr.bf16.mxu1 %v1695_v3  ;;  %v1537_v23 = vpack.c.bf16 %v30_v19, %v29_v18  ;;  %v1540_v24 = vpack.c.bf16 %v48_v21, %v47_v20  ;;  %v63_v25 = vld [vmem:[%s2429_s0 + $0x120] sm:$0xff]  ;;  %v64_v26 = vld [vmem:[%s2429_s0 + $0x128] sm:$0xff]  ;;  %v49_v29 = vld [vmem:[%s2429_s0 + $0xb0] sm:$0xff] }
   0x7   :  { %1536 = vmatprep.subr.msk.bf16.mxu0 %vm1754_vm1, %v1534_v15  ;;  %v31_v27 = vld [vmem:[%s2429_s0 + $0x20] sm:$0xff]  ;;  %v32_v28 = vld [vmem:[%s2429_s0 + $0x28] sm:$0xff]  ;;  %v50_v30 = vld [vmem:[%s2429_s0 + $0xb8] sm:$0xff]  ;;  %v1585_v31 = vpack.c.bf16 %v64_v26, %v63_v25 }
   0x8   :  { %v1832_v32 = vld [vmem:[%s2430_s1] sm:$0xff]  ;;  %v1543_v33 = vpack.c.bf16 %v32_v28, %v31_v27  ;;  %v1546_v34 = vpack.c.bf16 %v50_v30, %v49_v29  ;;  %v1842_v36 = vld [vmem:[%s2431_s2 + $0x10] sm:$0xff] }
   0x9   :  { %1396 = vmatprep.mubr.msk.f32.mxu0 %vm115_vm0, %v1832_v32  ;;  %v75_v35 = vld [vmem:[%s2431_s2] sm:$0xff]  ;;  %102 = vperm.xlu1 %1644, %v1842_v36  }
   0xa   :  { %92 = vperm.xlu0 %1643, %v75_v35  }
   0xd   :  { %1583 = vmatpush3.bf16.xpose.msk.msra.mxu1 %vm1754_vm1, %v1581_v22 }
   0xe   :  { %1539 = vmatpush3.bf16.xpose.msk.msra.mxu0 %vm1754_vm1, %v1537_v23  ;;  %1584 = vmatprep.subr.bf16.mxu1 %v1695_v3 }
   0xf   :  { %1542 = vmatprep.subr.msk.bf16.mxu0 %vm1754_vm1, %v1540_v24 }
  0x10   :  { %12 = vsyncpa [#allocation3], 0  ;;  %v76_v37 = vld [vmem:[%s2431_s2 + $0x8] sm:$0xff]  ;;  %v78_v38 = vld [vmem:[%s2431_s2 + $0x18] sm:$0xff]  ;;  %v1699_v49 = vmov 1   ;;  %v1700_v63 = vmov 2  }
  0x11   :  { %v65_v39 = vld [vmem:[%s2429_s0 + $0x130] sm:$0xff]  ;;  %v66_v40 = vld [vmem:[%s2429_s0 + $0x138] sm:$0xff]  ;;  %v51_v43 = vld [vmem:[%s2429_s0 + $0xc0] sm:$0xff]  ;;  %97 = vperm.xlu0 %1643, %v76_v37   ;;  %107 = vperm.xlu1 %1644, %v78_v38   ;;  %vm478_vm3 = vcmask 1044480   ;;  %vm696_vm4 = vcmask 302080  }
  0x12   :  { %v33_v41 = vld [vmem:[%s2429_s0 + $0x30] sm:$0xff]  ;;  %v34_v42 = vld [vmem:[%s2429_s0 + $0x38] sm:$0xff]  ;;  %v52_v44 = vld [vmem:[%s2429_s0 + $0xc8] sm:$0xff]  ;;  %v1589_v45 = vpack.c.bf16 %v66_v40, %v65_v39 }
  0x13   :  { %v79_v46 = vld [vmem:[%s2431_s2 + $0x20] sm:$0x1f]  ;;  %v1549_v47 = vpack.c.bf16 %v34_v42, %v33_v41  ;;  %v1552_v48 = vpack.c.bf16 %v52_v44, %v51_v43  ;;  %v68_v51 = vld [vmem:[%s2429_s0 + $0x148] sm:$0xff]  ;;  %v53_v54 = vld [vmem:[%s2429_s0 + $0xd0] sm:$0xff] }
  0x14   :  { %v67_v50 = vld [vmem:[%s2429_s0 + $0x140] sm:$0xff]  ;;  %v36_v53 = vld [vmem:[%s2429_s0 + $0x48] sm:$0xff]  ;;  %v54_v55 = vld [vmem:[%s2429_s0 + $0xd8] sm:$0xff] }
  0x15   :  { %1587 = vmatpush3.bf16.xpose.msk.msra.mxu1 %vm1754_vm1, %v1585_v31  ;;  %112 = vperm.xlu0 %1643, %v79_v46   ;;  %v35_v52 = vld [vmem:[%s2429_s0 + $0x40] sm:$0xff]  ;;  %v1593_v56 = vpack.c.bf16 %v68_v51, %v67_v50  ;;  %v1558_v58 = vpack.c.bf16 %v54_v55, %v53_v54  ;;  %v69_v59 = vld [vmem:[%s2429_s0 + $0x150] sm:$0xff]  ;;  %v70_v60 = vld [vmem:[%s2429_s0 + $0x158] sm:$0xff]  ;;  %v527_v55 = vlaneseq }
  0x16   :  { %1545 = vmatpush3.bf16.xpose.msk.msra.mxu0 %vm1754_vm1, %v1543_v33  ;;  %1588 = vmatprep.subr.bf16.mxu1 %v1695_v3  ;;  %v1555_v57 = vpack.c.bf16 %v36_v53, %v35_v52  ;;  %v37_v61 = vld [vmem:[%s2429_s0 + $0x50] sm:$0xff]  ;;  %v38_v62 = vld [vmem:[%s2429_s0 + $0x58] sm:$0xff]  ;;  %v55_v0 = vld [vmem:[%s2429_s0 + $0xe0] sm:$0xff]  ;;  %v1597_v2 = vpack.c.bf16 %v70_v60, %v69_v59 }
  0x17   :  { %1548 = vmatprep.subr.msk.bf16.mxu0 %vm1754_vm1, %v1546_v34  ;;  %1645 = vset.pattern.permute.xlu1 %v1699_v49  ;;  %v56_v1 = vld [vmem:[%s2429_s0 + $0xe8] sm:$0xff]  ;;  %v1561_v4 = vpack.c.bf16 %v38_v62, %v37_v61  ;;  %v71_v7 = vld [vmem:[%s2429_s0 + $0x160] sm:$0xff]  ;;  %v57_v11 = vld [vmem:[%s2429_s0 + $0xf0] sm:$0xff] }
  0x18   :  { %567 = vperm.xlu1 %1645, %v75_v35   ;;  %v1564_v6 = vpack.c.bf16 %v56_v1, %v55_v0  ;;  %v72_v8 = vld [vmem:[%s2429_s0 + $0x168] sm:$0xff]  ;;  %v39_v9 = vld [vmem:[%s2429_s0 + $0x60] sm:$0xff]  ;;  %v58_v14 = vld [vmem:[%s2429_s0 + $0xf8] sm:$0xff] }
  0x19   :  { %1646 = vset.pattern.permute.xlu0 %v1699_v49  ;;  %v40_v10 = vld [vmem:[%s2429_s0 + $0x68] sm:$0xff]  ;;  %v1601_v15 = vpack.c.bf16 %v72_v8, %v71_v7  ;;  %v1570_v17 = vpack.c.bf16 %v58_v14, %v57_v11  ;;  %v73_v18 = vld [vmem:[%s2429_s0 + $0x170] sm:$0xff]  ;;  %v74_v19 = vld [vmem:[%s2429_s0 + $0x178] sm:$0xff]  ;;  %v528_v8 = vshrl.u32 %v527_v55, 7 }
  0x1a   :  { %571 = vperm.xlu0 %1646, %v76_v37   ;;  %v1567_v16 = vpack.c.bf16 %v40_v10, %v39_v9  ;;  %v41_v20 = vld [vmem:[%s2429_s0 + $0x70] sm:$0xff]  ;;  %v42_v21 = vld [vmem:[%s2429_s0 + $0x78] sm:$0xff]  ;;  %v1605_v22 = vpack.c.bf16 %v74_v19, %v73_v18  ;;  %v86_v24 = vld [vmem:[%s2430_s1 + $0x8] sm:$0xff] }
  0x1b   :  { %v1573_v23 = vpack.c.bf16 %v42_v21, %v41_v20  ;;  %v87_v5 = vld [vmem:[%s2430_s1 + $0x10] sm:$0xff]  ;;  %v88_v25 = vld [vmem:[%s2430_s1 + $0x18] sm:$0xff]  ;;  %v89_v26 = vld [vmem:[%s2430_s1 + $0x20] sm:$0x1f] }
  0x1c   :  { %575 = vperm.xlu1 %1645, %v1842_v36   ;;  %v80_v27 = vld [vmem:[%s2433_s4] sm:$0xff]  ;;  %v81_v28 = vld [vmem:[%s2433_s4 + $0x8] sm:$0xff]  ;;  %v82_v29 = vld [vmem:[%s2433_s4 + $0x10] sm:$0xff] }
  0x1d   :  { %1591 = vmatpush3.bf16.xpose.msk.msra.mxu1 %vm1754_vm1, %v1589_v45  ;;  %v84_v30 = vld [vmem:[%s2433_s4 + $0x20] sm:$0x1f]  ;;  %v83_v31 = vld [vmem:[%s2433_s4 + $0x18] sm:$0xff] }
  0x1e   :  { %1551 = vmatpush3.bf16.xpose.msk.msra.mxu0 %vm1754_vm1, %v1549_v47  ;;  %1592 = vmatprep.subr.bf16.mxu1 %v1695_v3 }
  0x1f   :  { %1554 = vmatprep.subr.msk.bf16.mxu0 %vm1754_vm1, %v1552_v48  ;;  %1647 = vset.pattern.permute.xlu0 %v1700_v63 }
  0x20   :  { %579 = vperm.xlu1 %1645, %v78_v38   ;;  %617 = vperm.xlu0 %1647, %v75_v35  }
  0x24   :  { %1648 = vset.pattern.permute.xlu1 %v1700_v63  ;;  %629 = vperm.xlu0 %1647, %v78_v38  }
  0x25   :  { %1595 = vmatpush3.bf16.xpose.msk.msra.mxu1 %vm1754_vm1, %v1593_v56  ;;  %621 = vperm.xlu1 %1648, %v76_v37  }
  0x26   :  { %1557 = vmatpush3.bf16.xpose.msk.msra.mxu0 %vm1754_vm1, %v1555_v57  ;;  %1596 = vmatprep.subr.bf16.mxu1 %v1695_v3 }
  0x27   :  { %1560 = vmatprep.subr.msk.bf16.mxu0 %vm1754_vm1, %v1558_v58 }
  0x28   :  { %633 = vperm.xlu0 %1647, %v79_v46  }
  0x29   :  { %625 = vperm.xlu1 %1648, %v1842_v36  }
  0x2c   :  { %1651 = vset.pattern.permute.xlu0 %v1698_v13 }
  0x2d   :  { %1599 = vmatpush3.bf16.xpose.msk.msra.mxu1 %vm1754_vm1, %v1597_v2  ;;  %1649 = vset.pattern.permute.xlu1 %v1699_v49 }
  0x2e   :  { %1563 = vmatpush3.bf16.xpose.msk.msra.mxu0 %vm1754_vm1, %v1561_v4  ;;  %1600 = vmatprep.subr.bf16.mxu1 %v1695_v3 }
  0x2f   :  { %1566 = vmatprep.subr.msk.bf16.mxu0 %vm1754_vm1, %v1564_v6  ;;  %583 = vperm.xlu1 %1649, %v79_v46  }
  0x30   :  { %678 = vperm.xlu0 %1651, %v81_v28  }
  0x33   :  { %1650 = vset.pattern.permute.xlu1 %v1698_v13 }
  0x34   :  { %673 = vperm.xlu1 %1650, %v80_v27   ;;  %693 = vperm.xlu0 %1651, %v84_v30  }
  0x35   :  { %1603 = vmatpush3.bf16.xpose.msk.msra.mxu1 %vm1754_vm1, %v1601_v15 }
  0x36   :  { %1569 = vmatpush3.bf16.xpose.msk.msra.mxu0 %vm1754_vm1, %v1567_v16  ;;  %1604 = vmatprep.subr.bf16.mxu1 %v1695_v3 }
  0x37   :  { %1572 = vmatprep.subr.msk.bf16.mxu0 %vm1754_vm1, %v1570_v17 }
  0x38   :  { %683 = vperm.xlu1 %1650, %v82_v29   ;;  %1653 = vset.pattern.permute.xlu0 %v1699_v49 }
  0x39   :  { %1016 = vperm.xlu0 %1653, %v81_v28  }
  0x3c   :  { %688 = vperm.xlu1 %1650, %v83_v31  }
  0x3d   :  { %1607 = vmatpush3.bf16.xpose.msk.msra.mxu1 %vm1754_vm1, %v1605_v22  ;;  %1654 = vset.pattern.permute.xlu0 %v1700_v63 }
  0x3e   :  { %1575 = vmatpush3.bf16.xpose.msk.msra.mxu0 %vm1754_vm1, %v1573_v23  ;;  %1616 = vmatprep.subr.bf16.mxu1 %v1695_v3 }
  0x3f   :  { %1062 = vperm.xlu0 %1654, %v80_v27  }
  0x40   :  { %1652 = vset.pattern.permute.xlu1 %v1699_v49 }
  0x41   :  { %1012 = vperm.xlu1 %1652, %v80_v27  }
  0x43   :  { %1074 = vperm.xlu0 %1654, %v83_v31  }
  0x44   :  { %1476 = vmatmul.mubr.msk.f32.vlgmr.msra.gmra.mrb[0].mxu1 %vm115_vm0, %v1832_v32 }
  0x45   :  { %1397 = vmatmul.mubr.msk.f32.vlgmr.msra.gmra.mrb[0].mxu0 %vm115_vm0, %v1832_v32  ;;  %1478 = vmatprep.mubr.msk.f32.mxu1 %vm1696_vm2, %v1697_v12 }
  0x46   :  { %1398 = vmatprep.mubr.msk.f32.mxu0 %vm115_vm0, %v86_v24  ;;  %1020 = vperm.xlu1 %1652, %v82_v29  }
  0x47   :  { %1078 = vperm.xlu0 %1654, %v84_v30  }
  0x48   :  { %1479 = vmatmul.mubr.msk.f32.gmra.mrb[2].mxu1 %vm115_vm0, %v86_v24 }
  0x49   :  { %1399 = vmatmul.mubr.msk.f32.gmra.mrb[2].mxu0 %vm115_vm0, %v86_v24  ;;  %1481 = vmatprep.mubr.msk.f32.mxu1 %vm1696_vm2, %v1697_v12 }
  0x4a   :  { %1400 = vmatprep.mubr.msk.f32.mxu0 %vm115_vm0, %v87_v5  ;;  %1024 = vperm.xlu1 %1652, %v83_v31  }
  0x4b   :  { %1658 = vset.pattern.permute.xlu0 %v1698_v13 }
  0x4c   :  { %1482 = vmatmul.mubr.msk.f32.gmra.mrb[4].mxu1 %vm115_vm0, %v87_v5 }
  0x4d   :  { %1401 = vmatmul.mubr.msk.f32.gmra.mrb[4].mxu0 %vm115_vm0, %v87_v5  ;;  %1484 = vmatprep.mubr.msk.f32.mxu1 %vm1696_vm2, %v1697_v12  ;;  %v2094_v5 = vsub.s32 4, %v528_v8 }
  0x4e   :  { %1402 = vmatprep.mubr.msk.f32.mxu0 %vm115_vm0, %v88_v25  ;;  %1655 = vset.pattern.permute.xlu1 %v1700_v63 }
  0x4f   :  { %1066 = vperm.xlu1 %1655, %v81_v28  }
  0x50   :  { %1485 = vmatmul.mubr.msk.f32.gmra.mrb[6].mxu1 %vm115_vm0, %v88_v25 }
  0x51   :  { %1403 = vmatmul.mubr.msk.f32.gmra.mrb[6].mxu0 %vm115_vm0, %v88_v25  ;;  %1487 = vmatprep.mubr.msk.f32.mxu1 %vm1696_vm2, %v1697_v12 }
  0x52   :  { %1404 = vmatprep.mubr.msk.f32.mxu0 %vm115_vm0, %v89_v26 }
  0x53   :  { %1070 = vperm.xlu1 %1655, %v82_v29  }
  0x54   :  { %1488 = vmatmul.mubr.msk.f32.gmra.mrb[8].mxu1 %vm115_vm0, %v89_v26 }
  0x55   :  { %1405 = vmatmul.mubr.msk.f32.gmra.mrb[8].mxu0 %vm115_vm0, %v89_v26  ;;  %1500 = vmatprep.mubr.msk.f32.mxu1 %vm1696_vm2, %v1697_v12 }
  0x56   :  { %785 = vmatprep.mubr.f32.mxu0 %v1697_v12 }
  0x57   :  { %1656 = vset.pattern.permute.xlu1 %v1699_v49 }
  0x58   :  { %1028 = vperm.xlu1 %1656, %v84_v30  }
  0x5c   :  { %1657 = vset.pattern.permute.xlu1 %v1698_v13 }
  0x88   :  { %v103_v41 = vpop.permute.xlu1 %102 }
  0x89   :  { %v93_v32 = vpop.permute.xlu0 %92 }
  0x90   :  { %v98_v38 = vpop.permute.xlu0 %97  ;;  %v108_v1 = vpop.permute.xlu1 %107 }
  0x94   :  { %v113_v22 = vpop.permute.xlu0 %112 }
 0x117   :  { %v436_v33 = vpop.f32.mrb[0].mxu1 }
 0x118   :  { %v341_v34 = vpop.f32.mrb[0].mxu0  ;;  %v2046_v35 = vadd.f32 %v436_v33, %v93_v32  ;;  %v1477_v36 = vpop.f32.mrb[1].mxu1 }
 0x119   :  { %v343_v37 = vpop.f32.mrb[1].mxu0  ;;  %v2048_v39 = vadd.f32 %v341_v34, %v93_v32 }
 0x11a   :  { %v2050_v42 = vadd.f32 %v343_v37, %v93_v32  ;;  %v462_v43 = vmul.f32 %v2046_v35, %v2046_v35 }
 0x11b   :  { %v441_v40 = vpop.f32.mrb[2].mxu1  ;;  %v460_v52 = vmul.f32 %v2048_v39, %v2048_v39 }
 0x11c   :  { %v347_v44 = vpop.f32.mrb[2].mxu0  ;;  %v2054_v45 = vadd.f32 %v441_v40, %v98_v38  ;;  %v1480_v46 = vpop.f32.mrb[3].mxu1  ;;  %v461_v56 = vmul.f32 %v2050_v42, %v2050_v42 }
 0x11d   :  { %v2056_v47 = vadd.f32 %v347_v44, %v98_v38  ;;  %v349_v48 = vpop.f32.mrb[3].mxu0 }
 0x11e   :  { %v2058_v50 = vadd.f32 %v349_v48, %v98_v38  ;;  %v465_v51 = vmul.f32 %v2054_v45, %v2054_v45 }
 0x11f   :  { %v463_v53 = vmul.f32 %v2056_v47, %v2056_v47  ;;  %v446_v54 = vpop.f32.mrb[4].mxu1 }
 0x120   :  { %v464_v57 = vmul.f32 %v2058_v50, %v2058_v50  ;;  %v498_v58 = vadd.f32 %v465_v51, %v462_v43  ;;  %v2071_v59 = vadd.f32 %v446_v54, %v103_v41  ;;  %v353_v60 = vpop.f32.mrb[4].mxu0  ;;  %v1483_v61 = vpop.f32.mrb[5].mxu1 }
 0x121   :  { %v475_v62 = vadd.f32 %v463_v53, %v460_v52  ;;  %v2073_v63 = vadd.f32 %v353_v60, %v103_v41  ;;  %v355_v0 = vpop.f32.mrb[5].mxu0 }
 0x122   :  { %v487_v2 = vadd.f32 %v464_v57, %v461_v56  ;;  %v468_v49 = vmul.f32 %v2071_v59, %v2071_v59  ;;  %v2077_v4 = vadd.f32 %v355_v0, %v103_v41 }
 0x123   :  { %v466_v6 = vmul.f32 %v2073_v63, %v2073_v63  ;;  %v451_v7 = vpop.f32.mrb[6].mxu1 }
 0x124   :  { %v499_v9 = vadd.f32 %v498_v58, %v468_v49  ;;  %v467_v10 = vmul.f32 %v2077_v4, %v2077_v4  ;;  %v2083_v11 = vadd.f32 %v451_v7, %v108_v1  ;;  %v359_v14 = vpop.f32.mrb[6].mxu0  ;;  %v1486_v15 = vpop.f32.mrb[7].mxu1 }
 0x125   :  { %v476_v16 = vadd.f32 %v475_v62, %v466_v6  ;;  %v2086_v17 = vadd.f32 %v359_v14, %v108_v1  ;;  %v361_v18 = vpop.f32.mrb[7].mxu0 }
 0x126   :  { %v488_v19 = vadd.f32 %v487_v2, %v467_v10  ;;  %v471_v20 = vmul.f32 %v2083_v11, %v2083_v11  ;;  %v2090_v21 = vadd.f32 %v361_v18, %v108_v1 }
 0x127   :  { %v469_v23 = vmul.f32 %v2086_v17, %v2086_v17  ;;  %v456_v24 = vpop.f32.mrb[8].mxu1 }
 0x128   :  { %v500_v25 = vadd.f32 %v499_v9, %v471_v20  ;;  %v470_v13 = vmul.f32 %v2090_v21, %v2090_v21  ;;  %v2098_v26 = vadd.f32 %v456_v24, %v113_v22  ;;  %v365_v27 = vpop.f32.mrb[8].mxu0  ;;  %v1489_v28 = vpop.f32.mrb[9].mxu1 }
 0x129   :  { %v477_v29 = vadd.f32 %v476_v16, %v469_v23  ;;  %v2100_v30 = vadd.f32 %v365_v27, %v113_v22  ;;  %v367_v31 = vpop.f32.mrb[9].mxu0  ;;  %v568_v24 = vpop.permute.xlu1 %567 }
 0x12a   :  { %v489_v32 = vadd.f32 %v488_v19, %v470_v13  ;;  %v474_v33 = vmul.f32 %v2098_v26, %v2098_v26  ;;  %v2104_v34 = vadd.f32 %v367_v31, %v113_v22  ;;  %v2108_v36 = vrot.slane %v2098_v26, %v2094_v5 }
 0x12b   :  { %v472_v37 = vmul.f32 %v2100_v30, %v2100_v30  ;;  %v2114_v38 = vrot.slane %v2100_v30, %v2094_v5 }
 0x12c   :  { %v501_v40 = vsel %vm478_vm3, %v474_v33, 0.0  ;;  %v473_v41 = vmul.f32 %v2104_v34, %v2104_v34  ;;  %v2123_v51 = vrot.slane %v2104_v34, %v2094_v5  ;;  %v544_v55 = vsub.f32 %v2054_v45, %v2108_v36 }
 0x12d   :  { %v502_v43 = vadd.f32 %v501_v40, %v500_v25  ;;  %v479_v44 = vsel %vm478_vm3, %v472_v37, 0.0  ;;  %v542_v54 = vsub.f32 %v2056_v47, %v2114_v38  ;;  %v545_v58 = vsub.f32 %v2073_v63, %v2114_v38 }
 0x12e   :  { %v480_v46 = vadd.f32 %v479_v44, %v477_v29  ;;  %v490_v48 = vsel %vm478_vm3, %v473_v41, 0.0  ;;  %v543_v57 = vsub.f32 %v2058_v50, %v2123_v51  ;;  %v546_v62 = vsub.f32 %v2077_v4, %v2123_v51 }
 0x12f   :  { %v503_v52 = vrot.slane %v502_v43, 4  ;;  %v491_v53 = vadd.f32 %v490_v48, %v489_v32  ;;  %v547_v0 = vsub.f32 %v2071_v59, %v2108_v36  ;;  %v539_v2 = vsub.f32 %v2048_v39, %v2114_v38 }
 0x130   :  { %v481_v56 = vrot.slane %v480_v46, 4  ;;  %v540_v49 = vsub.f32 %v2050_v42, %v2123_v51  ;;  %v541_v6 = vsub.f32 %v2046_v35, %v2108_v36  ;;  %v548_v9 = vsub.f32 %v2086_v17, %v2114_v38 }
 0x131   :  { %v504_v60 = vadd.f32 %v503_v52, %v502_v43  ;;  %v492_v61 = vrot.slane %v491_v53, 4  ;;  %v549_v10 = vsub.f32 %v2090_v21, %v2123_v51  ;;  %v550_v15 = vsub.f32 %v2083_v11, %v2108_v36  ;;  %v576_v52 = vpop.permute.xlu1 %575 }
 0x132   :  { %v482_v1 = vadd.f32 %v481_v56, %v480_v46  ;;  %v514_v29 = vmul.f32 1.0277778, %v474_v33  ;;  %v512_v40 = vmul.f32 1.0277778, %v472_v37  ;;  %v513_v46 = vmul.f32 1.0277778, %v473_v41 }
 0x133   :  { %v505_v7 = vrot.slane %v504_v60, 2  ;;  %v493_v8 = vadd.f32 %v492_v61, %v491_v53 }
 0x134   :  { %v483_v14 = vrot.slane %v482_v1, 2 }
 0x135   :  { %v506_v16 = vadd.f32 %v505_v7, %v504_v60  ;;  %v494_v18 = vrot.slane %v493_v8, 2 }
 0x136   :  { %v484_v19 = vadd.f32 %v483_v14, %v482_v1  ;;  %v580_v14 = vpop.permute.xlu1 %579 }
 0x137   :  { %v507_v20 = vrot.slane %v506_v16, 1  ;;  %v495_v22 = vadd.f32 %v494_v18, %v493_v8 }
 0x138   :  { %v485_v23 = vrot.slane %v484_v19, 1 }
 0x139   :  { %v508_v25 = vadd.f32 %v507_v20, %v506_v16  ;;  %v496_v13 = vrot.slane %v495_v22, 1  ;;  %v572_v16 = vpop.permute.xlu0 %571  ;;  %v553_v20 = vsub.f32 %v2098_v26, %v2108_v36 }
 0x13a   :  { %v486_v27 = vadd.f32 %v485_v23, %v484_v19  ;;  %v2149_v33 = vpop.permute.xlu1 %621 }
 0x13b   :  { %v511_v28 = vmul.f32 0.027777778, %v508_v25  ;;  %v497_v31 = vadd.f32 %v496_v13, %v495_v22  ;;  %v551_v22 = vsub.f32 %v2100_v30, %v2114_v38  ;;  %v552_v25 = vsub.f32 %v2104_v34, %v2123_v51 }
 0x13c   :  { %v509_v32 = vmul.f32 0.027777778, %v486_v27 }
 0x13d   :  { %v517_v43 = vsub.f32 %v511_v28, %v514_v29  ;;  %v510_v44 = vmul.f32 0.027777778, %v497_v31 }
 0x13e   :  { %v515_v48 = vsub.f32 %v509_v32, %v512_v40  ;;  %v626_v29 = vpop.permute.xlu1 %625 }
 0x13f   :  { %v520_v53 = vmax.f32 %v517_v43, 0.0  ;;  %v516_v56 = vsub.f32 %v510_v44, %v513_v46 }
 0x140   :  { %v518_v60 = vmax.f32 %v515_v48, 0.0 }
 0x141   :  { %v523_v61 = vadd.f32 1e-05, %v520_v53  ;;  %v519_v1 = vmax.f32 %v516_v56, 0.0  ;;  %v618_v53 = vpop.permute.xlu0 %617 }
 0x142   :  { %v521_v7 = vadd.f32 1e-05, %v518_v60 }
 0x143   :  { %1659 = vrsqrt.f32 %v523_v61  ;;  %v522_v8 = vadd.f32 1e-05, %v519_v1 }
 0x144   :  { %1661 = vrsqrt.f32 %v521_v7 }
 0x145   :  { %1663 = vrsqrt.f32 %v522_v8  ;;  %v630_v8 = vpop.permute.xlu0 %629 }
 0x14d   :  { %v1660_v37 = vpop.eup %1659 }
 0x14e   :  { %v1662_v18 = vpop.eup %1661  ;;  %v565_v41 = vrot.slane %v1660_v37, %v2094_v5 }
 0x14f   :  { %v1664_v19 = vpop.eup %1663  ;;  %v557_v23 = vrot.slane %v1662_v18, %v2094_v5 }
 0x150   :  { %v561_v13 = vrot.slane %v1664_v19, %v2094_v5  ;;  %v588_v27 = vmul.f32 %v568_v24, %v565_v41  ;;  %v594_v28 = vmul.f32 %v576_v52, %v565_v41  ;;  %v597_v40 = vmul.f32 %v580_v14, %v565_v41 }
 0x151   :  { %v586_v31 = vmul.f32 %v568_v24, %v557_v23  ;;  %v592_v32 = vmul.f32 %v576_v52, %v557_v23  ;;  %v589_v43 = vmul.f32 %v572_v16, %v557_v23  ;;  %v595_v26 = vmul.f32 %v580_v14, %v557_v23 }
 0x152   :  { %v587_v44 = vmul.f32 %v568_v24, %v561_v13  ;;  %v593_v46 = vmul.f32 %v576_v52, %v561_v13  ;;  %v590_v48 = vmul.f32 %v572_v16, %v561_v13  ;;  %v591_v30 = vmul.f32 %v572_v16, %v565_v41 }
 0x153   :  { %v604_v56 = vmul.f32 %v589_v43, %v542_v54  ;;  %v607_v34 = vmul.f32 %v592_v32, %v545_v58  ;;  %v609_v60 = vmul.f32 %v594_v28, %v547_v0  ;;  %v601_v47 = vmul.f32 %v586_v31, %v539_v2  ;;  %v584_v0 = vpop.permute.xlu1 %583 }
 0x154   :  { %v605_v24 = vmul.f32 %v590_v48, %v543_v57  ;;  %v608_v52 = vmul.f32 %v593_v46, %v546_v62  ;;  %v602_v63 = vmul.f32 %v587_v44, %v540_v49  ;;  %v596_v54 = vmul.f32 %v580_v14, %v561_v13 }
 0x155   :  { %v606_v59 = vmul.f32 %v591_v30, %v544_v55  ;;  %v639_v50 = vadd.f32 %v2149_v33, %v604_v56  ;;  %v642_v57 = vadd.f32 %v626_v29, %v607_v34  ;;  %v603_v4 = vmul.f32 %v588_v27, %v541_v6  ;;  %v668_v30 = vld [vmem:[%s2432_s3 + $0x10] sm:$0xff]  ;;  %v669_v56 = vld [vmem:[%s2432_s3 + $0x18] sm:$0xff]  ;;  %v670_v34 = vld [vmem:[%s2432_s3 + $0x20] sm:$0x1f] }
 0x156   :  { %v643_v58 = vadd.f32 %v626_v29, %v608_v52  ;;  %v636_v62 = vadd.f32 %v618_v53, %v601_v47  ;;  %v637_v39 = vadd.f32 %v618_v53, %v602_v63  ;;  %v644_v42 = vadd.f32 %v626_v29, %v609_v60  ;;  %v1112_v60 = vld [vmem:[%s2435_s6] sm:$0xff] }
 0x157   :  { %v641_v2 = vadd.f32 %v2149_v33, %v606_v59  ;;  %v657_v49 = vmax.f32 %v642_v57, 0.0  ;;  %v654_v61 = vmax.f32 %v639_v50, 0.0  ;;  %v638_v7 = vadd.f32 %v618_v53, %v603_v4  ;;  %v667_v53 = vld [vmem:[%s2432_s3 + $0x8] sm:$0xff]  ;;  %1115 = vperm.xlu1 %1657, %v1112_v60  }
 0x158   :  { %v658_v1 = vmax.f32 %v643_v58, 0.0  ;;  %v651_v45 = vmax.f32 %v636_v62, 0.0  ;;  %v652_v55 = vmax.f32 %v637_v39, 0.0  ;;  %v598_v16 = vmul.f32 %v584_v0, %v557_v23 }
 0x159   :  { %v656_v14 = vmax.f32 %v641_v2, 0.0  ;;  %v599_v37 = vmul.f32 %v584_v0, %v561_v13  ;;  %v600_v18 = vmul.f32 %v584_v0, %v565_v41  ;;  %v653_v19 = vmax.f32 %v638_v7, 0.0 }
 0x15a   :  { %v1610_v35 = vpack.c.bf16 %v654_v61, %v651_v45  ;;  %v610_v6 = vmul.f32 %v595_v26, %v548_v9  ;;  %v611_v27 = vmul.f32 %v596_v54, %v549_v10  ;;  %v612_v28 = vmul.f32 %v597_v40, %v550_v15  ;;  %v634_v9 = vpop.permute.xlu0 %633  ;;  %v666_v40 = vld [vmem:[%s2432_s3] sm:$0xff] }
 0x15b   :  { %v613_v29 = vmul.f32 %v598_v16, %v551_v22  ;;  %v614_v31 = vmul.f32 %v599_v37, %v552_v25  ;;  %v615_v32 = vmul.f32 %v600_v18, %v553_v20  ;;  %v1617_v23 = vpack.c.bf16 %v656_v14, %v653_v19 }
 0x15c   :  { %v645_v13 = vadd.f32 %v630_v8, %v610_v6  ;;  %v646_v41 = vadd.f32 %v630_v8, %v611_v27  ;;  %v640_v43 = vadd.f32 %v2149_v33, %v605_v24  ;;  %v659_v44 = vmax.f32 %v644_v42, 0.0  ;;  %v674_v24 = vpop.permute.xlu1 %673 }
 0x15d   :  { %v647_v46 = vadd.f32 %v630_v8, %v612_v28  ;;  %1618 = vmatpush3.bf16.msra.mxu1 %v1617_v23  ;;  %v650_v20 = vadd.f32 %v634_v9, %v615_v32  ;;  %v649_v22 = vadd.f32 %v634_v9, %v614_v31  ;;  %v648_v33 = vadd.f32 %v634_v9, %v613_v29 }
 0x15e   :  { %v660_v17 = vmax.f32 %v645_v13, 0.0  ;;  %v661_v38 = vmax.f32 %v646_v41, 0.0  ;;  %v655_v21 = vmax.f32 %v640_v43, 0.0  ;;  %1619 = vmatprep.subr.bf16.mxu1 %v1695_v3  ;;  %v679_v54 = vpop.permute.xlu0 %678 }
 0x15f   :  { %v662_v51 = vmax.f32 %v647_v46, 0.0  ;;  %v665_v25 = vmax.f32 %v650_v20, 0.0  ;;  %v664_v26 = vmax.f32 %v649_v22, 0.0  ;;  %v663_v48 = vmax.f32 %v648_v33, 0.0 }
 0x160   :  { %v1614_v11 = vpack.c.bf16 %v660_v17, %v657_v49  ;;  %v1608_v36 = vpack.c.bf16 %v655_v21, %v652_v55  ;;  %v1612_v10 = vpack.c.bf16 %v661_v38, %v658_v1  ;;  %v684_v59 = vpop.permute.xlu1 %683 }
 0x161   :  { %v1620_v15 = vpack.c.bf16 %v662_v51, %v659_v44 }
 0x162   :  { %1609 = vmatprep.subr.bf16.mxu0 %v1608_v36  ;;  %v694_v46 = vpop.permute.xlu0 %693 }
 0x163   :  { %1611 = vmatpush1.bf16.msra.mxu0 %v1610_v35  ;;  %1621 = vmatpush3.bf16.msra.mxu1 %v1620_v15 }
 0x164   :  { %1613 = vmatprep.subr.bf16.mxu0 %v1612_v10  ;;  %1498 = vmatprep.subr.mxu1 %v1697_v12  ;;  %v689_v16 = vpop.permute.xlu1 %688 }
 0x167   :  { %1615 = vmatpush1.bf16.msra.mxu0 %v1614_v11  ;;  %1499 = vmatpush3.msk.msra.mxu1 %vm478_vm3, %v665_v25 }
 0x168   :  { %1346 = vmatprep.subr.msk.mxu0 %vm478_vm3, %v664_v26  ;;  %1501 = vmatmul.mubr.msk.f32.vlgmr.msra.gmra.mrb[10].mxu1 %vm696_vm4, %v666_v40 }
 0x169   :  { %1503 = vmatprep.mubr.msk.f32.mxu1 %vm1696_vm2, %v1697_v12  ;;  %1630 = vmatprep.subr.bf16.mxu1 %v1695_v3 }
 0x16b   :  { %1347 = vmatpush1.msk.msra.mxu0 %vm478_vm3, %v663_v48 }
 0x16c   :  { %1348 = vmatmul.mubr.msk.f32.vlgmr.msra.gmra.mrb[10].mxu0 %vm696_vm4, %v666_v40  ;;  %1504 = vmatmul.mubr.msk.f32.gmra.mrb[12].mxu1 %vm696_vm4, %v667_v53 }
 0x16d   :  { %791 = vmatprep.mubr.f32.mxu0 %v1697_v12  ;;  %1506 = vmatprep.mubr.msk.f32.mxu1 %vm1696_vm2, %v1697_v12 }
 0x170   :  { %1349 = vmatmul.mubr.msk.f32.gmra.mrb[12].mxu0 %vm696_vm4, %v667_v53  ;;  %1507 = vmatmul.mubr.msk.f32.gmra.mrb[14].mxu1 %vm696_vm4, %v668_v30 }
 0x171   :  { %797 = vmatprep.mubr.f32.mxu0 %v1697_v12  ;;  %1509 = vmatprep.mubr.msk.f32.mxu1 %vm1696_vm2, %v1697_v12 }
 0x174   :  { %1350 = vmatmul.mubr.msk.f32.gmra.mrb[14].mxu0 %vm696_vm4, %v668_v30  ;;  %1510 = vmatmul.mubr.msk.f32.gmra.mrb[16].mxu1 %vm696_vm4, %v669_v56 }
 0x175   :  { %803 = vmatprep.mubr.f32.mxu0 %v1697_v12  ;;  %1512 = vmatprep.mubr.msk.f32.mxu1 %vm1696_vm2, %v1697_v12 }
 0x178   :  { %1351 = vmatmul.mubr.msk.f32.gmra.mrb[16].mxu0 %vm696_vm4, %v669_v56  ;;  %1513 = vmatmul.mubr.msk.f32.gmra.mrb[18].mxu1 %vm696_vm4, %v670_v34 }
 0x179   :  { %809 = vmatprep.mubr.f32.mxu0 %v1697_v12  ;;  %1525 = vmatprep.mubr.msk.f32.mxu1 %vm1696_vm2, %v1697_v12 }
 0x17c   :  { %1352 = vmatmul.mubr.msk.f32.gmra.mrb[18].mxu0 %vm696_vm4, %v670_v34 }
 0x17d   :  { %1194 = vmatprep.mubr.f32.mxu0 %v1697_v12 }
 0x23b   :  { %v882_v52 = vpop.f32.mrb[10].mxu1 }
 0x23c   :  { %v2248_v47 = vadd.f32 %v882_v52, %v674_v24  ;;  %v1502_v63 = vpop.f32.mrb[11].mxu1 }
 0x23e   :  { %v908_v4 = vmul.f32 %v2248_v47, %v2248_v47 }
 0x23f   :  { %v787_v50 = vpop.f32.mrb[10].mxu0  ;;  %v887_v57 = vpop.f32.mrb[12].mxu1 }
 0x240   :  { %v789_v58 = vpop.f32.mrb[11].mxu0  ;;  %v2252_v62 = vadd.f32 %v887_v57, %v679_v54  ;;  %v1505_v39 = vpop.f32.mrb[13].mxu1  ;;  %v2254_v0 = vadd.f32 %v787_v50, %v674_v24 }
 0x241   :  { %v2258_v42 = vadd.f32 %v789_v58, %v674_v24 }
 0x242   :  { %v911_v2 = vmul.f32 %v2252_v62, %v2252_v62  ;;  %v906_v37 = vmul.f32 %v2254_v0, %v2254_v0 }
 0x243   :  { %v793_v49 = vpop.f32.mrb[12].mxu0  ;;  %v892_v61 = vpop.f32.mrb[14].mxu1  ;;  %v907_v35 = vmul.f32 %v2258_v42, %v2258_v42 }
 0x244   :  { %v943_v1 = vadd.f32 %v911_v2, %v908_v4  ;;  %v2260_v7 = vadd.f32 %v793_v49, %v679_v54  ;;  %v795_v45 = vpop.f32.mrb[13].mxu0  ;;  %v2262_v55 = vadd.f32 %v892_v61, %v684_v59  ;;  %v1508_v8 = vpop.f32.mrb[15].mxu1 }
 0x245   :  { %v2264_v14 = vadd.f32 %v795_v45, %v679_v54 }
 0x246   :  { %v909_v18 = vmul.f32 %v2260_v7, %v2260_v7  ;;  %v914_v19 = vmul.f32 %v2262_v55, %v2262_v55 }
 0x247   :  { %v910_v6 = vmul.f32 %v2264_v14, %v2264_v14  ;;  %v799_v27 = vpop.f32.mrb[14].mxu0  ;;  %v897_v28 = vpop.f32.mrb[16].mxu1 }
 0x248   :  { %v921_v29 = vadd.f32 %v909_v18, %v906_v37  ;;  %v944_v31 = vadd.f32 %v943_v1, %v914_v19  ;;  %v2276_v32 = vadd.f32 %v799_v27, %v684_v59  ;;  %v801_v23 = vpop.f32.mrb[15].mxu0  ;;  %v2278_v13 = vadd.f32 %v897_v28, %v689_v16  ;;  %v1511_v41 = vpop.f32.mrb[17].mxu1 }
 0x249   :  { %v932_v43 = vadd.f32 %v910_v6, %v907_v35  ;;  %v2280_v44 = vadd.f32 %v801_v23, %v684_v59  ;;  %v2329_v1 = vpop.permute.xlu1 %1012 }
 0x24a   :  { %v912_v17 = vmul.f32 %v2276_v32, %v2276_v32  ;;  %v917_v38 = vmul.f32 %v2278_v13, %v2278_v13 }
 0x24b   :  { %v913_v9 = vmul.f32 %v2280_v44, %v2280_v44  ;;  %v805_v21 = vpop.f32.mrb[16].mxu0  ;;  %v902_v51 = vpop.f32.mrb[18].mxu1 }
 0x24c   :  { %v922_v11 = vadd.f32 %v921_v29, %v912_v17  ;;  %v945_v36 = vadd.f32 %v944_v31, %v917_v38  ;;  %v2288_v10 = vadd.f32 %v805_v21, %v689_v16  ;;  %v807_v15 = vpop.f32.mrb[17].mxu0  ;;  %v2290_v20 = vadd.f32 %v902_v51, %v694_v46  ;;  %v1514_v22 = vpop.f32.mrb[19].mxu1 }
 0x24d   :  { %v933_v33 = vadd.f32 %v932_v43, %v913_v9  ;;  %v2292_v25 = vadd.f32 %v807_v15, %v689_v16  ;;  %v2347_v38 = vpop.permute.xlu1 %1020 }
 0x24e   :  { %v915_v40 = vmul.f32 %v2288_v10, %v2288_v10  ;;  %v920_v26 = vmul.f32 %v2290_v20, %v2290_v20  ;;  %v2300_v48 = vrot.slane %v2290_v20, %v2094_v5 }
 0x24f   :  { %v916_v53 = vmul.f32 %v2292_v25, %v2292_v25  ;;  %v811_v30 = vpop.f32.mrb[18].mxu0 }
 0x250   :  { %v923_v56 = vadd.f32 %v922_v11, %v915_v40  ;;  %v946_v34 = vsel %vm478_vm3, %v920_v26, 0.0  ;;  %v813_v60 = vpop.f32.mrb[19].mxu0  ;;  %v2305_v63 = vadd.f32 %v811_v30, %v694_v46  ;;  %v989_v59 = vsub.f32 %v2252_v62, %v2300_v48 }
 0x251   :  { %v934_v24 = vadd.f32 %v933_v33, %v916_v53  ;;  %v947_v52 = vadd.f32 %v946_v34, %v945_v36  ;;  %v2307_v54 = vadd.f32 %v813_v60, %v694_v46  ;;  %v992_v50 = vsub.f32 %v2262_v55, %v2300_v48 }
 0x252   :  { %v986_v57 = vsub.f32 %v2248_v47, %v2300_v48  ;;  %v995_v58 = vsub.f32 %v2278_v13, %v2300_v48  ;;  %v918_v39 = vmul.f32 %v2305_v63, %v2305_v63  ;;  %v2321_v2 = vrot.slane %v2305_v63, %v2094_v5 }
 0x253   :  { %v948_v4 = vrot.slane %v947_v52, 4  ;;  %v919_v49 = vmul.f32 %v2307_v54, %v2307_v54  ;;  %v2327_v61 = vrot.slane %v2307_v54, %v2094_v5  ;;  %v959_v40 = vmul.f32 1.0277778, %v920_v26 }
 0x254   :  { %v924_v8 = vsel %vm478_vm3, %v918_v39, 0.0  ;;  %v987_v35 = vsub.f32 %v2260_v7, %v2321_v2  ;;  %v990_v28 = vsub.f32 %v2276_v32, %v2321_v2  ;;  %v984_v31 = vsub.f32 %v2254_v0, %v2321_v2 }
 0x255   :  { %v949_v45 = vadd.f32 %v948_v4, %v947_v52  ;;  %v925_v16 = vadd.f32 %v924_v8, %v923_v56  ;;  %v935_v37 = vsel %vm478_vm3, %v919_v49, 0.0  ;;  %v988_v6 = vsub.f32 %v2264_v14, %v2327_v61  ;;  %v1025_v56 = vpop.permute.xlu1 %1024 }
 0x256   :  { %v936_v19 = vadd.f32 %v935_v37, %v934_v24  ;;  %v991_v29 = vsub.f32 %v2280_v44, %v2327_v61  ;;  %v985_v43 = vsub.f32 %v2258_v42, %v2327_v61  ;;  %v993_v46 = vsub.f32 %v2288_v10, %v2321_v2 }
 0x257   :  { %v950_v18 = vrot.slane %v949_v45, 2  ;;  %v926_v27 = vrot.slane %v925_v16, 4  ;;  %v994_v9 = vsub.f32 %v2292_v25, %v2327_v61  ;;  %v957_v8 = vmul.f32 1.0277778, %v918_v39 }
 0x258   :  { %v937_v41 = vrot.slane %v936_v19, 4  ;;  %v997_v55 = vsub.f32 %v2307_v54, %v2327_v61 }
 0x259   :  { %v951_v23 = vadd.f32 %v950_v18, %v949_v45  ;;  %v927_v17 = vadd.f32 %v926_v27, %v925_v16  ;;  %v958_v18 = vmul.f32 1.0277778, %v919_v49  ;;  %v2351_v27 = vpop.permute.xlu1 %1066 }
 0x25a   :  { %v938_v51 = vadd.f32 %v937_v41, %v936_v19 }
 0x25b   :  { %v952_v21 = vrot.slane %v951_v23, 1  ;;  %v928_v11 = vrot.slane %v927_v17, 2 }
 0x25c   :  { %v939_v15 = vrot.slane %v938_v51, 2 }
 0x25d   :  { %v953_v36 = vadd.f32 %v952_v21, %v951_v23  ;;  %v929_v22 = vadd.f32 %v928_v11, %v927_v17  ;;  %v1017_v11 = vpop.permute.xlu0 %1016 }
 0x25e   :  { %v940_v53 = vadd.f32 %v939_v15, %v938_v51  ;;  %v1071_v51 = vpop.permute.xlu1 %1070 }
 0x25f   :  { %v956_v33 = vmul.f32 0.027777778, %v953_v36  ;;  %v930_v30 = vrot.slane %v929_v22, 1 }
 0x260   :  { %v941_v60 = vrot.slane %v940_v53, 1 }
 0x261   :  { %v962_v34 = vsub.f32 %v956_v33, %v959_v40  ;;  %v931_v24 = vadd.f32 %v930_v30, %v929_v22 }
 0x262   :  { %v942_v4 = vadd.f32 %v941_v60, %v940_v53  ;;  %v1029_v39 = vpop.permute.xlu1 %1028  ;;  %v998_v53 = vsub.f32 %v2290_v20, %v2300_v48 }
 0x263   :  { %v965_v52 = vmax.f32 %v962_v34, 0.0  ;;  %v954_v45 = vmul.f32 0.027777778, %v931_v24 }
 0x264   :  { %v955_v37 = vmul.f32 0.027777778, %v942_v4 }
 0x265   :  { %v968_v16 = vadd.f32 1e-05, %v965_v52  ;;  %v960_v19 = vsub.f32 %v954_v45, %v957_v8  ;;  %v1063_v52 = vpop.permute.xlu0 %1062  ;;  %v996_v8 = vsub.f32 %v2305_v63, %v2321_v2 }
 0x266   :  { %v961_v23 = vsub.f32 %v955_v37, %v958_v18 }
 0x267   :  { %1665 = vrsqrt.f32 %v968_v16  ;;  %v963_v41 = vmax.f32 %v960_v19, 0.0 }
 0x268   :  { %v964_v26 = vmax.f32 %v961_v23, 0.0 }
 0x269   :  { %v966_v17 = vadd.f32 1e-05, %v963_v41 }
 0x26a   :  { %v967_v21 = vadd.f32 1e-05, %v964_v26 }
 0x26b   :  { %1667 = vrsqrt.f32 %v966_v17 }
 0x26c   :  { %1669 = vrsqrt.f32 %v967_v21 }
 0x271   :  { %v1666_v36 = vpop.eup %1665 }
 0x272   :  { %v1010_v15 = vrot.slane %v1666_v36, %v2094_v5 }
 0x274   :  { %v1033_v22 = vmul.f32 %v2329_v1, %v1010_v15  ;;  %v1039_v49 = vmul.f32 %v2347_v38, %v1010_v15  ;;  %v1042_v33 = vmul.f32 %v1025_v56, %v1010_v15  ;;  %v1036_v40 = vmul.f32 %v1017_v11, %v1010_v15 }
 0x275   :  { %v1045_v30 = vmul.f32 %v1029_v39, %v1010_v15  ;;  %v1668_v34 = vpop.eup %1667 }
 0x276   :  { %v1051_v60 = vmul.f32 %v1036_v40, %v989_v59  ;;  %v1054_v24 = vmul.f32 %v1039_v49, %v992_v50  ;;  %v1048_v4 = vmul.f32 %v1033_v22, %v986_v57  ;;  %v1057_v45 = vmul.f32 %v1042_v33, %v995_v58  ;;  %v1670_v20 = vpop.eup %1669 }
 0x277   :  { %v1002_v62 = vrot.slane %v1668_v34, %v2094_v5  ;;  %v1060_v59 = vmul.f32 %v1045_v30, %v998_v53  ;;  %v1006_v50 = vrot.slane %v1670_v20, %v2094_v5 }
 0x278   :  { %v1086_v16 = vadd.f32 %v2351_v27, %v1051_v60  ;;  %v1083_v47 = vadd.f32 %v1063_v52, %v1048_v4  ;;  %v1089_v58 = vadd.f32 %v1071_v51, %v1054_v24 }
 0x279   :  { %v1031_v57 = vmul.f32 %v2329_v1, %v1002_v62  ;;  %v1037_v13 = vmul.f32 %v2347_v38, %v1002_v62  ;;  %v1034_v48 = vmul.f32 %v1017_v11, %v1002_v62  ;;  %v1032_v37 = vmul.f32 %v2329_v1, %v1006_v50 }
 0x27a   :  { %v1038_v63 = vmul.f32 %v2347_v38, %v1006_v50  ;;  %v1040_v18 = vmul.f32 %v1025_v56, %v1002_v62  ;;  %v1035_v19 = vmul.f32 %v1017_v11, %v1006_v50  ;;  %v1041_v23 = vmul.f32 %v1025_v56, %v1006_v50  ;;  %v1075_v56 = vpop.permute.xlu0 %1074 }
 0x27b   :  { %v1049_v5 = vmul.f32 %v1034_v48, %v987_v35  ;;  %v1052_v54 = vmul.f32 %v1037_v13, %v990_v28  ;;  %v1046_v41 = vmul.f32 %v1031_v57, %v984_v31  ;;  %v1047_v7 = vmul.f32 %v1032_v37, %v985_v43 }
 0x27c   :  { %v1050_v1 = vmul.f32 %v1035_v19, %v988_v6  ;;  %v1053_v38 = vmul.f32 %v1038_v63, %v991_v29  ;;  %v1098_v35 = vmax.f32 %v1083_v47, 0.0  ;;  %v1101_v0 = vmax.f32 %v1086_v16, 0.0 }
 0x27d   :  { %v1084_v32 = vadd.f32 %v2351_v27, %v1049_v5  ;;  %v1087_v28 = vadd.f32 %v1071_v51, %v1052_v54  ;;  %v1081_v26 = vadd.f32 %v1063_v52, %v1046_v41  ;;  %v1082_v17 = vadd.f32 %v1063_v52, %v1047_v7 }
 0x27e   :  { %v1088_v31 = vadd.f32 %v1071_v51, %v1053_v38  ;;  %v1043_v21 = vmul.f32 %v1029_v39, %v1002_v62  ;;  %v1044_v14 = vmul.f32 %v1029_v39, %v1006_v50  ;;  %v1104_v6 = vmax.f32 %v1089_v58, 0.0  ;;  %v1079_v30 = vpop.permute.xlu0 %1078 }
 0x27f   :  { %v1096_v11 = vmax.f32 %v1081_v26, 0.0  ;;  %v1099_v36 = vmax.f32 %v1084_v32, 0.0  ;;  %v1631_v44 = vpack.c.bf16 %v1101_v0, %v1098_v35  ;;  %v1102_v29 = vmax.f32 %v1087_v28, 0.0 }
 0x280   :  { %v1103_v15 = vmax.f32 %v1088_v31, 0.0  ;;  %v1055_v42 = vmul.f32 %v1040_v18, %v993_v46  ;;  %v1056_v43 = vmul.f32 %v1041_v23, %v994_v9  ;;  %v1092_v49 = vadd.f32 %v1075_v56, %v1057_v45 }
 0x281   :  { %v1624_v22 = vpack.c.bf16 %v1099_v36, %v1096_v11  ;;  %v1058_v51 = vmul.f32 %v1043_v21, %v996_v8  ;;  %v1059_v33 = vmul.f32 %v1044_v14, %v997_v55  ;;  %1632 = vmatpush3.bf16.msra.mxu1 %v1631_v44  ;;  %v1097_v39 = vmax.f32 %v1082_v17, 0.0 }
 0x282   :  { %v1090_v40 = vadd.f32 %v1075_v56, %v1055_v42  ;;  %v1091_v53 = vadd.f32 %v1075_v56, %v1056_v43  ;;  %1633 = vmatprep.subr.bf16.mxu1 %v1695_v3  ;;  %v1085_v34 = vadd.f32 %v2351_v27, %v1050_v1  ;;  %v1107_v60 = vmax.f32 %v1092_v49, 0.0  ;;  %v1111_v3 = vld [vmem:[%s2434_s5] sm:$0xff]  ;;  %s1701_s5 = smov [#allocation2]  }
 0x283   :  { %v1095_v25 = vadd.f32 %v1079_v30, %v1060_v59  ;;  %v1094_v4 = vadd.f32 %v1079_v30, %v1059_v33  ;;  %v1093_v27 = vadd.f32 %v1079_v30, %v1058_v51  ;;  %s1280_s17 = sshll.u32 %s1701_s5, 4  ;;  %s1281_s17 = int_to_ptr.vmem [resolvable:$true] %s1280_s17 }
 0x284   :  { %v1105_v10 = vmax.f32 %v1090_v40, 0.0  ;;  %v1106_v2 = vmax.f32 %v1091_v53, 0.0  ;;  %v1100_v46 = vmax.f32 %v1085_v34, 0.0  ;;  %v1634_v24 = vpack.c.bf16 %v1107_v60, %v1104_v6  ;;  %s1671_s18 = scalar_lea.vmem %s1281_s17, 384  ;;  %p1676_p1 = scmp.lt.s32.totalorder %s1281_s17, %s1281_s17 }
 0x285   :  { %v1110_v45 = vmax.f32 %v1095_v25, 0.0  ;;  %v1109_v20 = vmax.f32 %v1094_v4, 0.0  ;;  %v1108_v8 = vmax.f32 %v1093_v27, 0.0  ;;  %p1672_p0 = scmp.ne.s32.totalorder %s1281_s17, %s1671_s18  ;;  %p1677_p2 = scmp.lt.s32.totalorder %s1671_s18, %s1671_s18 }
 0x286   :  { %v1628_v61 = vpack.c.bf16 %v1105_v10, %v1102_v29  ;;  %v1622_v9 = vpack.c.bf16 %v1100_v46, %v1097_v39  ;;  %v1626_v52 = vpack.c.bf16 %v1106_v2, %v1103_v15  ;;  %1635 = vmatpush3.bf16.msra.mxu1 %v1634_v24 }
 0x287   :  { %1523 = vmatprep.subr.mxu1 %v1697_v12  ;;  %v1116_v12 = vpop.permute.xlu1 %1115  ;;  %p1678_p3 = por %p1677_p2, %p1676_p1 }
 0x288   :  { %1623 = vmatprep.subr.bf16.mxu0 %v1622_v9 }
 0x289   :  { %1625 = vmatpush1.bf16.msra.mxu0 %v1624_v22  ;;  %p1679_p4 = pnand %p1678_p3, %p1672_p0 }
 0x28a   :  { %1627 = vmatprep.subr.bf16.mxu0 %v1626_v52  ;;  %1524 = vmatpush3.msk.msra.mxu1 %vm478_vm3, %v1110_v45 }
 0x28b   :  { %1526 = vmatmul.mubr.msk.f32.vlgmr.msra.gmra.mrb[20].mxu1 %vm696_vm4, %v1111_v3 }
 0x28d   :  { %1629 = vmatpush1.bf16.msra.mxu0 %v1628_v61 }
 0x28e   :  { %1359 = vmatprep.subr.msk.mxu0 %vm478_vm3, %v1109_v20 }
 0x291   :  { %1360 = vmatpush1.msk.msra.mxu0 %vm478_vm3, %v1108_v8 }
 0x292   :  { %1361 = vmatmul.mubr.msk.f32.vlgmr.msra.gmra.mrb[20].mxu0 %vm696_vm4, %v1111_v3 }
 0x35e   :  { %v1267_v62 = vpop.f32.mrb[20].mxu1 }
 0x35f   :  { %v1268_v59 = vadd.f32 %v1267_v62, %v1116_v12  ;;  %v1527_v55 = vpop.f32.mrb[21].mxu1 }
 0x361   :  { %1273 = vst [vmem:[#allocation2 + $0x10] sm:$0xff] %v1268_v59 }
 0x365   :  { %v1196_v50 = vpop.f32.mrb[20].mxu0 }
 0x366   :  { %v1197_v16 = vadd.f32 %v1196_v50, %v1116_v12  ;;  %v1198_v47 = vpop.f32.mrb[21].mxu0 }
 0x367   :  { %v1199_v57 = vadd.f32 %v1198_v47, %v1116_v12 }
 0x368   :  { %1271 = vst [vmem:[#allocation2] sm:$0xff] %v1197_v16 }
 0x369   :  { %1272 = vst [vmem:[#allocation2 + $0x8] sm:$0xff] %v1199_v57 }
 0x36a   :  { %1682 = shalt.err (!%p1679_p4)
}
 0x36b   :  { %s1683_s2 = scalar_lea.hbm %s2436_s7, 384 }
 0x36c   :  { %p1684_p5 = scmp.ne.s32.totalorder %s2436_s7, %s1683_s2  ;;  %p1687_p6 = scmp.lt.u32.totalorder %s1683_s2, %s2436_s7 }
 0x36e   :  { %p1689_p7 = pnand %p1687_p6, %p1684_p5 }
 0x370   :  { %1692 = shalt.err (!%p1689_p7)
}
 0x371   :  { %1283 = dma.vmem_to_hbm [thread:$0]  %s1281_s17, 384, %s2436_s7, [#allocation3]  }
 0x372   :  { %1693 = dma.done.wait [#allocation3], 384  }
 0x373   :  { %1694 = vsyncadd [#allocation3], 4294966912 }
 0x374   :  { %1287 = vsyncpa [#allocation3], 1 }

</bundles_post_ra>
